<compile_context>
chip_gen: v5e
topology: v5e:2x2
jax: 0.10.0
libtpu: 0.0.40
codegen_flags: <defaults>
</compile_context>

<pallas_src>
import jax
import jax.numpy as jnp
from jax.experimental import pallas as pl
from jax.experimental.pallas import tpu as pltpu


def _linreg_kernel(w_ref, b_ref, y_ref, o_ref):
    # w_ref: [K] SMEM  shared local regression weights
    # b_ref: [1] SMEM  bias
    # y_ref: [TB, S] VMEM  row-block of the corrupted input (un-padded)
    # o_ref: [TB, S] VMEM  binary predictions (logits > 0) as float
    TB, S = y_ref.shape
    K = w_ref.shape[0]
    L = (K - 1) // 2
    use_roll = (S % 128 == 0)  # lane-aligned: shift on the XLU, mask with vselect

    y = y_ref[...]
    if use_roll:
        # One column-id iota reused by every tap's boundary mask.
        col = jax.lax.broadcasted_iota(jnp.int32, (TB, S), 1)

    acc = jnp.full((TB, S), b_ref[0], dtype=jnp.float32)

    # K = 2L+1 is tiny (7); the Python loop unrolls at trace time.
    # Tap offset d = k - L: output position i reads source index i + d.
    # Out-of-range taps contribute exactly 0, which matches the torch
    # reflect-pad + boundary-mask formulation (masked taps contribute 0).
    for k in range(K):
        d = k - L
        if d == 0:
            win = y
        elif abs(d) >= S:
            win = jnp.zeros((TB, S), jnp.float32)
        elif use_roll:
            # roll brings y[i+d] to column i; wrapped lanes are zeroed.
            win = pltpu.roll(y, shift=(-d) % S, axis=1)
            if d > 0:
                win = jnp.where(col < S - d, win, 0.0)
            else:
                win = jnp.where(col >= -d, win, 0.0)
        else:
            # Small / lane-unaligned S: slice + zero-fill (perf immaterial here).
            if d > 0:
                win = jnp.concatenate(
                    [y[:, d:], jnp.zeros((TB, d), jnp.float32)], axis=1)
            else:
                win = jnp.concatenate(
                    [jnp.zeros((TB, -d), jnp.float32), y[:, :S + d]], axis=1)
        acc = acc + win * w_ref[k]          # one vmul + one vadd per elem per tap

    o_ref[...] = (acc > 0).astype(o_ref.dtype)


def _choose_block_rows(B, S, target_bytes=2 << 20):
    """Largest multiple-of-8 row tile with one f32 [TB, S] buffer <= target_bytes.
    No divisibility requirement on B (grid uses cdiv + partial final block).
    When the batch splits at all, prefer an even number of grid blocks so the
    'parallel' batch axis load-balances across v7x's two TensorCores."""
    if B <= 8:
        return B
    rows_cap = max(8, (target_bytes // (4 * S)) // 8 * 8)
    tb = min(1024, rows_cap, (B // 8) * 8)
    tb = max(8, (tb // 8) * 8)

    def nblk(t):
        return -(-B // t)

    while tb > 8 and nblk(tb) > 1 and nblk(tb) % 2 == 1:
        tb = max(8, (tb // 2 // 8) * 8)
    return tb


def linear_regression_forward(Y, weights, bias, L, *, target_block_bytes=2 << 20):
    """Pallas implementation of LinearRegression.forward. Y: [B, S] -> [B, S] float32."""
    B, S = Y.shape
    K = 2 * L + 1
    assert weights.shape == (K,)

    Y = Y.astype(jnp.float32)
    weights = weights.astype(jnp.float32)
    bias = bias.astype(jnp.float32)

    TB = _choose_block_rows(B, S, target_block_bytes)
    grid = (pl.cdiv(B, TB),)

    cost = pl.CostEstimate(
        flops=2 * B * S * K,
        transcendentals=0,
        bytes_accessed=2 * B * S * 4 + (K + 1) * 4,
    )

    return pl.pallas_call(
        _linreg_kernel,
        out_shape=jax.ShapeDtypeStruct((B, S), jnp.float32),
        grid=grid,
        in_specs=[
            pl.BlockSpec(memory_space=pltpu.MemorySpace.SMEM),  # weights [K]
            pl.BlockSpec(memory_space=pltpu.MemorySpace.SMEM),  # bias [1]
            pl.BlockSpec((TB, S), lambda i: (i, 0)),            # Y row-block
        ],
        out_specs=pl.BlockSpec((TB, S), lambda i: (i, 0)),
        compiler_params=pltpu.CompilerParams(
            # batch tiles are independent -> shard over v7x's two TensorCores
            dimension_semantics=("parallel",),
            # headroom beyond the 16/32 MiB scoped defaults, still < v7x's 64 MiB
            vmem_limit_bytes=48 << 20,
        ),
        cost_estimate=cost,
    )(weights, bias, Y)


def build_boundary_mask(S, L, dtype=jnp.float32):
    """Mask the PyTorch module builds: [S, K], zeros where the window runs past
    the sequence boundary (used only by the pure-JAX reference)."""
    K = 2 * L + 1
    pos = jnp.arange(S)[:, None]          # [S, 1]
    kk = jnp.arange(K)[None, :]           # [1, K]
    lead_zero = kk < (L - pos)
    trail_zero = kk >= (K - (pos - (S - L - 1)))
    return jnp.where(lead_zero | trail_zero, 0.0, 1.0).astype(dtype)


def reference_forward(Y, weights, bias, L):
    """Pure-JAX reference mirroring the torch forward (reflect pad + unfold + mask)."""
    B, S = Y.shape
    K = 2 * L + 1
    Yp = jnp.pad(Y.astype(jnp.float32), ((0, 0), (L, L)), mode="reflect")
    Yu = jnp.stack([Yp[:, k:k + S] for k in range(K)], axis=-1)     # [B, S, K]
    mask = build_boundary_mask(S, L)                                # [S, K]
    logits = (Yu * mask[None]) @ weights.astype(jnp.float32) + bias[0]
    return (logits > 0).astype(jnp.float32)


if __name__ == "__main__":
    L = 3
    K = 2 * L + 1
    key = jax.random.PRNGKey(0)
    k_y1, k_y2, k_y3, k_w = jax.random.split(key, 4)

    weights = jnp.linspace(-0.5, 0.5, K, dtype=jnp.float32) + 0.05 * jax.random.normal(
        k_w, (K,), dtype=jnp.float32
    )
    bias = jnp.array([0.1], dtype=jnp.float32)

    # Test 1: module-sized toy shape (lane-unaligned S=16 -> slice fallback path).
    B1, S1 = 4, 16
    Y1 = jax.random.normal(k_y1, (B1, S1), dtype=jnp.float32)
    out1 = jax.block_until_ready(linear_regression_forward(Y1, weights, bias, L))
    ref1 = reference_forward(Y1, weights, bias, L)
    assert out1.shape == (B1, S1) and out1.dtype == jnp.float32
    assert jnp.array_equal(out1, ref1), "Pallas output mismatch vs reference (toy shape)"

    # Test 2: lane-aligned S -> roll + select path, single block (tiny problem).
    B2, S2 = 24, 256
    Y2 = jax.random.normal(k_y2, (B2, S2), dtype=jnp.float32)
    out2 = jax.block_until_ready(linear_regression_forward(Y2, weights, bias, L))
    ref2 = reference_forward(Y2, weights, bias, L)
    assert out2.shape == (B2, S2) and out2.dtype == jnp.float32
    assert jnp.array_equal(out2, ref2), "Pallas output mismatch vs reference (aligned shape)"

    # Test 3: force a multi-block (even) grid to exercise the pipelined path.
    B3, S3 = 64, 256
    Y3 = jax.random.normal(k_y3, (B3, S3), dtype=jnp.float32)
    out3 = jax.block_until_ready(
        linear_regression_forward(Y3, weights, bias, L, target_block_bytes=32 << 10))
    ref3 = reference_forward(Y3, weights, bias, L)
    assert out3.shape == (B3, S3) and out3.dtype == jnp.float32
    assert jnp.array_equal(out3, ref3), "Pallas output mismatch vs reference (tiled shape)"

    print("KERNEL_OK")
</pallas_src>

<mosaic_0001>
module attributes {stable_mosaic.version = 11 : i64} {
  func.func @_linreg_kernel(%arg0: i32, %arg1: memref<7xf32, #tpu.memory_space<smem>>, %arg2: memref<1xf32, #tpu.memory_space<smem>>, %arg3: memref<4x16xf32, #tpu.memory_space<vmem>>, %arg4: memref<4x16xf32, #tpu.memory_space<vmem>>) attributes {dimension_semantics = [#tpu.dimension_semantics<parallel>], iteration_bounds = array<i64: 1>, scalar_prefetch = 0 : i64, scratch_operands = 0 : i64, tpu.core_type = #tpu.core_type<tc>, window_params = [{transform_indices = @transform_0, window_bounds = array<i64: 7>}, {transform_indices = @transform_1, window_bounds = array<i64: 1>}, {transform_indices = @transform_2, window_bounds = array<i64: 4, 16>}, {transform_indices = @transform_3, window_bounds = array<i64: 4, 16>}]} {
    %c0 = arith.constant 0 : index
    %c0_0 = arith.constant 0 : index
    %0 = vector.load %arg3[%c0, %c0_0] : memref<4x16xf32, #tpu.memory_space<vmem>>, vector<4x16xf32>
    %c0_1 = arith.constant 0 : index
    %1 = memref.load %arg2[%c0_1] : memref<1xf32, #tpu.memory_space<smem>>
    %2 = vector.broadcast %1 : f32 to vector<4x16xf32>
    %cst = arith.constant 0.000000e+00 : f32
    %3 = vector.broadcast %cst : f32 to vector<4x3xf32>
    %4 = vector.extract_strided_slice %0 {offsets = [0, 0], sizes = [4, 13], strides = [1, 1]} : vector<4x16xf32> to vector<4x13xf32>
    %5 = tpu.concatenate %3, %4 in 1 : vector<4x3xf32>, vector<4x13xf32> -> vector<4x16xf32>
    %c0_2 = arith.constant 0 : index
    %6 = memref.load %arg1[%c0_2] : memref<7xf32, #tpu.memory_space<smem>>
    %7 = vector.broadcast %6 : f32 to vector<4x16xf32>
    %8 = arith.mulf %5, %7 : vector<4x16xf32>
    %9 = arith.addf %2, %8 : vector<4x16xf32>
    %cst_3 = arith.constant 0.000000e+00 : f32
    %10 = vector.broadcast %cst_3 : f32 to vector<4x2xf32>
    %11 = vector.extract_strided_slice %0 {offsets = [0, 0], sizes = [4, 14], strides = [1, 1]} : vector<4x16xf32> to vector<4x14xf32>
    %12 = tpu.concatenate %10, %11 in 1 : vector<4x2xf32>, vector<4x14xf32> -> vector<4x16xf32>
    %c1 = arith.constant 1 : index
    %13 = memref.load %arg1[%c1] : memref<7xf32, #tpu.memory_space<smem>>
    %14 = vector.broadcast %13 : f32 to vector<4x16xf32>
    %15 = arith.mulf %12, %14 : vector<4x16xf32>
    %16 = arith.addf %9, %15 : vector<4x16xf32>
    %cst_4 = arith.constant 0.000000e+00 : f32
    %17 = vector.broadcast %cst_4 : f32 to vector<4x1xf32>
    %18 = vector.extract_strided_slice %0 {offsets = [0, 0], sizes = [4, 15], strides = [1, 1]} : vector<4x16xf32> to vector<4x15xf32>
    %19 = tpu.concatenate %17, %18 in 1 : vector<4x1xf32>, vector<4x15xf32> -> vector<4x16xf32>
    %c2 = arith.constant 2 : index
    %20 = memref.load %arg1[%c2] : memref<7xf32, #tpu.memory_space<smem>>
    %21 = vector.broadcast %20 : f32 to vector<4x16xf32>
    %22 = arith.mulf %19, %21 : vector<4x16xf32>
    %23 = arith.addf %16, %22 : vector<4x16xf32>
    %c3 = arith.constant 3 : index
    %24 = memref.load %arg1[%c3] : memref<7xf32, #tpu.memory_space<smem>>
    %25 = vector.broadcast %24 : f32 to vector<4x16xf32>
    %26 = arith.mulf %0, %25 : vector<4x16xf32>
    %27 = arith.addf %23, %26 : vector<4x16xf32>
    %28 = vector.extract_strided_slice %0 {offsets = [0, 1], sizes = [4, 15], strides = [1, 1]} : vector<4x16xf32> to vector<4x15xf32>
    %cst_5 = arith.constant 0.000000e+00 : f32
    %29 = vector.broadcast %cst_5 : f32 to vector<4x1xf32>
    %30 = tpu.concatenate %28, %29 in 1 : vector<4x15xf32>, vector<4x1xf32> -> vector<4x16xf32>
    %c4 = arith.constant 4 : index
    %31 = memref.load %arg1[%c4] : memref<7xf32, #tpu.memory_space<smem>>
    %32 = vector.broadcast %31 : f32 to vector<4x16xf32>
    %33 = arith.mulf %30, %32 : vector<4x16xf32>
    %34 = arith.addf %27, %33 : vector<4x16xf32>
    %35 = vector.extract_strided_slice %0 {offsets = [0, 2], sizes = [4, 14], strides = [1, 1]} : vector<4x16xf32> to vector<4x14xf32>
    %cst_6 = arith.constant 0.000000e+00 : f32
    %36 = vector.broadcast %cst_6 : f32 to vector<4x2xf32>
    %37 = tpu.concatenate %35, %36 in 1 : vector<4x14xf32>, vector<4x2xf32> -> vector<4x16xf32>
    %c5 = arith.constant 5 : index
    %38 = memref.load %arg1[%c5] : memref<7xf32, #tpu.memory_space<smem>>
    %39 = vector.broadcast %38 : f32 to vector<4x16xf32>
    %40 = arith.mulf %37, %39 : vector<4x16xf32>
    %41 = arith.addf %34, %40 : vector<4x16xf32>
    %42 = vector.extract_strided_slice %0 {offsets = [0, 3], sizes = [4, 13], strides = [1, 1]} : vector<4x16xf32> to vector<4x13xf32>
    %cst_7 = arith.constant 0.000000e+00 : f32
    %43 = vector.broadcast %cst_7 : f32 to vector<4x3xf32>
    %44 = tpu.concatenate %42, %43 in 1 : vector<4x13xf32>, vector<4x3xf32> -> vector<4x16xf32>
    %c6 = arith.constant 6 : index
    %45 = memref.load %arg1[%c6] : memref<7xf32, #tpu.memory_space<smem>>
    %46 = vector.broadcast %45 : f32 to vector<4x16xf32>
    %47 = arith.mulf %44, %46 : vector<4x16xf32>
    %48 = arith.addf %41, %47 : vector<4x16xf32>
    %cst_8 = arith.constant 0.000000e+00 : f32
    %49 = vector.broadcast %cst_8 : f32 to vector<4x16xf32>
    %50 = arith.cmpf ogt, %48, %49 : vector<4x16xf32>
    %51 = arith.extui %50 : vector<4x16xi1> to vector<4x16xi32>
    %52 = arith.sitofp %51 : vector<4x16xi32> to vector<4x16xf32>
    %c0_9 = arith.constant 0 : index
    %c0_10 = arith.constant 0 : index
    %53 = vector.load %arg4[%c0_9, %c0_10] : memref<4x16xf32, #tpu.memory_space<vmem>>, vector<4x16xf32>
    tpu.vector_store %arg4[%c0_9, %c0_10], %52 {strides = array<i32>} : memref<4x16xf32, #tpu.memory_space<vmem>>, vector<4x16xf32>,
    return
  }
  func.func @transform_0(%arg0: i32) -> i32 {
    %c0_i32 = arith.constant 0 : i32
    %c0_i32_0 = arith.constant 0 : i32
    return %c0_i32 : i32
  }
  func.func @transform_1(%arg0: i32) -> i32 {
    %c0_i32 = arith.constant 0 : i32
    %c0_i32_0 = arith.constant 0 : i32
    return %c0_i32 : i32
  }
  func.func @transform_2(%arg0: i32) -> (i32, i32) {
    %c0_i32 = arith.constant 0 : i32
    %c0_i32_0 = arith.constant 0 : i32
    return %arg0, %c0_i32 : i32, i32
  }
  func.func @transform_3(%arg0: i32) -> (i32, i32) {
    %c0_i32 = arith.constant 0 : i32
    %c0_i32_0 = arith.constant 0 : i32
    return %arg0, %c0_i32 : i32, i32
  }
}

</mosaic_0001>

<bundles_post_ra>
// kernel: tpu_custom_call.1
= control target key start
LH: loop header
LB: loop body
LE: loop exit
PB: predicated region body
PF: predicated region fallthrough
CT: control target
= control target key end

     0   :  { %9 = vsyncpa [#allocation6], 0  ;;  %s253_s0 = inlined_call_operand.vmem [shape: f32[7], index: 0, kind: input, shape index: {}]   ;;  %s254_s1 = inlined_call_operand.<no memory space> [shape: f32[1], index: 1, kind: input, shape index: {}]   ;;  %s255_s2 = inlined_call_operand.hbm [shape: f32[4,16], index: 2, kind: input, shape index: {}]   ;;  %s256_s3 = inlined_call_operand.hbm [shape: f32[4,16], index: 3, kind: output, shape index: {}]  }
   0x1   :  { %10 = vsyncpa [#allocation4], 0 }
   0x2   :  { %11 = vsyncpa [#allocation5], 0  ;;  %s17_s14 = sshll.u32 %s253_s0, 4  ;;  %s28_s17 = sshll.u32 %s255_s2, 4  ;;  %s18_s14 = int_to_ptr.vmem [resolvable:$true] %s17_s14  ;;  %s29_s17 = int_to_ptr.hbm [resolvable:$true] %s28_s17 }
   0x3   :  { %s211_s18 = smov [#allocation3]   ;;  %s212_s19 = smov [#allocation7]  }
   0x4   :  { %20 = dma.vmem_to_smem %s18_s14, 16, %s211_s18, [#allocation6]  }
   0x5   :  { %s30_s20 = sshll.u32 %s212_s19, 4  ;;  %s31_s20 = int_to_ptr.vmem [resolvable:$true] %s30_s20 }
   0x6   :  { %33 = dma.hbm_to_vmem [thread:$0]  %s29_s17, 64, %s31_s20, [#allocation4]  }
   0x7   :  { %205 = dma.done.wait [#allocation6], 16  }
   0x8   :  { %206 = vsyncadd [#allocation6], 4294967280 }
   0x9   :  { %207 = dma.done.wait [#allocation4], 64  }
   0xa   :  { %208 = vsyncadd [#allocation4], 4294967232 }
   0xb   :  { %42 = sfence }
   0xc   :  { %v43_v0 = vld [vmem:[#allocation7] sm:$0xf]  ;;  %s213_s21 = smov 3   ;;  %s214_s0 = smov 1   ;;  %vm50_vm0 = vcmask 23552   ;;  %vm68_vm1 = vcmask 7168   ;;  %v45_v7 = vstv %s254_s1 }
   0xd   :  { %47 = vrot.lane.b32.xlu0 %v43_v0, %s213_s21  ;;  %65 = vrot.lane.b32.xlu1 %v43_v0, %s214_s0  ;;  %s215_s22 = smov 126   ;;  %s216_s2 = smov 2   ;;  %vm59_vm2 = vcmask 15360   ;;  %vm81_vm3 = vcmask 121856   ;;  %vm90_vm4 = vcmask 113664   ;;  %vm99_vm5 = vcmask 105472  }
   0xe   :  { %87 = vrot.lane.b32.xlu2 %v43_v0, %s215_s22  ;;  %s217_s23 = smov 127   ;;  %s218_s24 = smov 125   ;;  %vm108_vm6 = vcmask 125952   ;;  %v220_v35 = vmov 0.0  }
   0xf   :  { %s52_s25 = sld [smem:[#allocation3]]  ;;  %s219_s1 = smov [#allocation8]  }
  0x10   :  { %s128_s26 = sld [smem:[#allocation3 + $0x1]]  ;;  %s115_s7 = sshll.u32 %s219_s1, 4  ;;  %s116_s7 = int_to_ptr.vmem [resolvable:$true] %s115_s7 }
  0x11   :  { %s129_s27 = sld [smem:[#allocation3 + $0x2]]  ;;  %s117_s10 = sshll.u32 %s256_s3, 4  ;;  %s118_s10 = int_to_ptr.hbm [resolvable:$true] %s117_s10 }
  0x12   :  { %s130_s28 = sld [smem:[#allocation3 + $0x3]] }
  0x13   :  { %s131_s29 = sld [smem:[#allocation3 + $0x4]] }
  0x14   :  { %s132_s30 = sld [smem:[#allocation3 + $0x5]] }
  0x15   :  { %56 = vrot.lane.b32.xlu0 %v43_v0, %s216_s2  ;;  %78 = vrot.lane.b32.xlu1 %v43_v0, %s217_s23  ;;  %v53_v4 = vstv %s52_s25  ;;  %s133_s6 = sld [smem:[#allocation3 + $0x6]] }
  0x16   :  { %96 = vrot.lane.b32.xlu2 %v43_v0, %s218_s24  ;;  %v62_v8 = vstv %s128_s26 }
  0x17   :  { %v71_v11 = vstv %s129_s27 }
  0x18   :  { %v75_v14 = vstv %s130_s28 }
  0x19   :  { %v84_v17 = vstv %s131_s29  ;;  %v76_v21 = vmul.f32 %v75_v14, %v43_v0 }
  0x1a   :  { %v93_v25 = vstv %s132_s30 }
  0x1b   :  { %v102_v27 = vstv %s133_s6 }
  0x68   :  { %v88_v3 = vpop.permute.xlu2 %87 }
  0x69   :  { %v91_v26 = vsel %vm90_vm4, %v88_v3, 0.0 }
  0x6a   :  { %v94_v30 = vmul.f32 %v93_v25, %v91_v26 }
  0x70   :  { %v97_v22 = vpop.permute.xlu2 %96 }
  0x71   :  { %v100_v28 = vsel %vm99_vm5, %v97_v22, 0.0 }
  0x72   :  { %v103_v32 = vmul.f32 %v102_v27, %v100_v28 }
  0x7f   :  { %v48_v1 = vpop.permute.xlu0 %47  ;;  %v66_v2 = vpop.permute.xlu1 %65 }
  0x80   :  { %v51_v5 = vsel %vm50_vm0, 0.0, %v48_v1  ;;  %v69_v12 = vsel %vm68_vm1, 0.0, %v66_v2 }
  0x81   :  { %v54_v6 = vmul.f32 %v53_v4, %v51_v5  ;;  %v72_v19 = vmul.f32 %v71_v11, %v69_v12 }
  0x83   :  { %v55_v15 = vadd.f32 %v54_v6, %v45_v7 }
  0x87   :  { %v57_v9 = vpop.permute.xlu0 %56  ;;  %v79_v10 = vpop.permute.xlu1 %78 }
  0x88   :  { %v60_v13 = vsel %vm59_vm2, 0.0, %v57_v9  ;;  %v82_v18 = vsel %vm81_vm3, %v79_v10, 0.0 }
  0x89   :  { %v63_v16 = vmul.f32 %v62_v8, %v60_v13  ;;  %v85_v24 = vmul.f32 %v84_v17, %v82_v18 }
  0x8b   :  { %v64_v20 = vadd.f32 %v63_v16, %v55_v15 }
  0x8d   :  { %v73_v23 = vadd.f32 %v72_v19, %v64_v20 }
  0x8f   :  { %v77_v29 = vadd.f32 %v76_v21, %v73_v23 }
  0x91   :  { %v86_v31 = vadd.f32 %v85_v24, %v77_v29 }
  0x93   :  { %v95_v33 = vadd.f32 %v94_v30, %v86_v31 }
  0x95   :  { %v104_v34 = vadd.f32 %v103_v32, %v95_v33 }
  0x97   :  { %vm105_vm7 = vcmp.gt.f32.partialorder %v104_v34, 0.0 }
  0x98   :  { %v134_v36 = vsel %vm105_vm7, 1.0, %v220_v35 }
  0x99   :  { %109 = vst.msk [vmem:[#allocation8] sm:$0xf] %vm108_vm6, %v134_v36 }
  0x9a   :  { %120 = dma.vmem_to_hbm [thread:$0]  %s116_s7, 64, %s118_s10, [#allocation5]  }
  0x9b   :  { %209 = dma.done.wait [#allocation5], 64  }
  0x9c   :  { %210 = vsyncadd [#allocation5], 4294967232 }
  0x9d   :  { %125 = vsyncpa [#allocation4], 1 }
  0x9e   :  { %126 = vsyncpa [#allocation5], 1 }
  0x9f   :  { %127 = vsyncpa [#allocation6], 1 }

</bundles_post_ra>
